<compile_context>
chip_gen: v7x
topology: tpu7x:2x2x1
jax: 0.10.0
libtpu: 0.0.40
codegen_flags: <defaults>
</compile_context>

<pallas_src>
import jax
import jax.numpy as jnp
import numpy as np
from jax.experimental import pallas as pl
from jax.experimental.pallas import tpu as pltpu


def _round_up(n, m):
    return ((n + m - 1) // m) * m


def _ssm_kp_kernel(logits_ref, coef_ref, kp_ref):
    # logits_ref: (Nb, HW)   coef_ref: (HW, 128) with cols [yy, xx, ones, 0...]
    # kp_ref:     (Nb, 2)    float32 output [E[y], E[x]]
    l = logits_ref[...].astype(jnp.float32)                   # (Nb, HW)

    # Numerically-stable softmax pieces (softmax itself never materialized).
    m = jnp.max(l, axis=-1, keepdims=True)                    # (Nb, 1)  XLU
    e = jnp.exp(l - m)                                        # (Nb, HW) EUP/VPU

    # One MXU pass replaces the three lane reductions:
    #   r[:, 0] = sum(e * yy),  r[:, 1] = sum(e * xx),  r[:, 2] = sum(e)
    r = jnp.dot(e, coef_ref[...],
                preferred_element_type=jnp.float32,
                precision=jax.lax.Precision.HIGHEST)          # (Nb, 128)

    inv_s = pl.reciprocal(r[:, 2:3], approx=False)            # exact 1/sum(e)
    kp_ref[...] = (r[:, 0:2] * inv_s).astype(kp_ref.dtype)    # lanes 0..1 -> 0..1


def _pick_row_block(n_rows, hw, target_tile_bytes=2 << 20):
    """Rows per grid step.

    Targets ~target_tile_bytes of f32 input per tile (amortizes per-step
    overhead, bounds VMEM), multiple of 8 sublanes, and — when the row count
    allows it — at least 2 grid steps so a v7x megacore can split the
    "parallel" row axis across its two TensorCores.
    """
    if n_rows <= 8:
        return n_rows                                         # single full block
    budget_rows = max(8, (target_tile_bytes // (4 * hw)) // 8 * 8)
    two_step_rows = _round_up(pl.cdiv(n_rows, 2), 8)
    return int(min(budget_rows, two_step_rows))


def spatial_softmax_kp(heatmap, kp_range=(-1.0, 1.0)):
    """heatmap: (B, K, H, W) float array (f32 or bf16). Returns kp: (B, K, 2)."""
    B, K, H, W = heatmap.shape
    N = B * K
    HW = H * W

    # Lane-dense (N, HW) view.  No padding copy: the last row-block is ragged
    # and Pallas masks its out-of-range reads/stores.
    logits = heatmap.reshape(N, HW)

    # Constant coefficient matrix, built once on the host.  Its block index is
    # constant across the grid so it is DMA'd into VMEM exactly once.
    # yy[h*W + w] = y[h],  xx[h*W + w] = x[w].
    y = jnp.linspace(kp_range[0], kp_range[1], H, dtype=jnp.float32)
    x = jnp.linspace(kp_range[0], kp_range[1], W, dtype=jnp.float32)
    cols = jnp.stack(
        [jnp.repeat(y, W), jnp.tile(x, H), jnp.ones((HW,), jnp.float32)], axis=1)
    coef = jnp.pad(cols, ((0, 0), (0, 128 - cols.shape[1])))   # (HW, 128)

    Nb = _pick_row_block(N, HW)
    grid = (pl.cdiv(N, Nb),)

    # Explicit VMEM budget: double-buffered input tile + f32 temporaries (l, e)
    # + resident coefficient matrix (lane-padded) + matmul result, with ~1.5x
    # headroom; clamped so it fits every TPU generation (v7x: 64 MiB per TC).
    in_itemsize = jnp.dtype(heatmap.dtype).itemsize
    est = (2 * Nb * HW * in_itemsize        # double-buffered input blocks
           + 2 * Nb * HW * 4                # f32 temporaries (l, e)
           + 2 * HW * 128 * 4               # coefficient matrix
           + 2 * Nb * 128 * 4               # MXU result
           + (2 << 20))                     # slack
    vmem_limit = int(min(max(est * 3 // 2, 32 << 20), 64 << 20))

    kp_flat = pl.pallas_call(
        _ssm_kp_kernel,
        out_shape=jax.ShapeDtypeStruct((N, 2), jnp.float32),
        grid_spec=pltpu.PrefetchScalarGridSpec(
            num_scalar_prefetch=0,
            grid=grid,
            in_specs=[
                pl.BlockSpec((Nb, HW), lambda i: (i, 0)),     # heatmap rows
                pl.BlockSpec((HW, 128), lambda i: (0, 0)),    # constant coeffs
            ],
            out_specs=pl.BlockSpec((Nb, 2), lambda i: (i, 0)),
        ),
        compiler_params=pltpu.CompilerParams(
            dimension_semantics=("parallel",),
            vmem_limit_bytes=vmem_limit,
        ),
    )(logits, coef)

    # Computed in f32; cast back to the input dtype for module fidelity.
    return kp_flat.reshape(B, K, 2).astype(heatmap.dtype)


def _reference(heatmap, kp_range=(-1.0, 1.0)):
    """Pure-JAX mirror of the PyTorch forward (default args), for checking."""
    B, K, H, W = heatmap.shape
    logits = heatmap.reshape(B, K, H * W)
    scores = jax.nn.softmax(logits, axis=-1).reshape(B, K, H, W)
    y_axis = jnp.linspace(kp_range[0], kp_range[1], H, dtype=jnp.float32)
    x_axis = jnp.linspace(kp_range[0], kp_range[1], W, dtype=jnp.float32)
    sm_h = scores.sum(axis=-1)                    # (B, K, H)
    sm_w = scores.sum(axis=-2)                    # (B, K, W)
    kp_h = jnp.sum(sm_h * y_axis, axis=-1)
    kp_w = jnp.sum(sm_w * x_axis, axis=-1)
    return jnp.stack([kp_h, kp_w], axis=-1)       # (B, K, 2)


if __name__ == "__main__":
    B, K, H, W = 2, 4, 16, 16
    key = jax.random.PRNGKey(0)
    heatmap = jax.random.normal(key, (B, K, H, W), jnp.float32)

    kp = spatial_softmax_kp(heatmap, kp_range=(-1.0, 1.0))
    kp = jax.block_until_ready(kp)

    ref = _reference(heatmap, kp_range=(-1.0, 1.0))
    np.testing.assert_allclose(np.asarray(kp), np.asarray(ref),
                               rtol=1e-5, atol=1e-5)
    print("KERNEL_OK")
</pallas_src>

<mosaic_0001>
module attributes {stable_mosaic.version = 11 : i64} {
  func.func @_ssm_kp_kernel(%arg0: i32, %arg1: memref<8x256xf32, #tpu.memory_space<vmem>>, %arg2: memref<256x128xf32, #tpu.memory_space<vmem>>, %arg3: memref<8x2xf32, #tpu.memory_space<vmem>>) attributes {dimension_semantics = [#tpu.dimension_semantics<parallel>], iteration_bounds = array<i64: 1>, scalar_prefetch = 0 : i64, scratch_operands = 0 : i64, tpu.core_type = #tpu.core_type<tc>, window_params = [{transform_indices = @transform_0, window_bounds = array<i64: 8, 256>}, {pipeline_mode = #tpu.pipeline_mode<synchronous>, transform_indices = @transform_1, window_bounds = array<i64: 256, 128>}, {transform_indices = @transform_2, window_bounds = array<i64: 8, 2>}]} {
    %c0 = arith.constant 0 : index
    %c0_0 = arith.constant 0 : index
    %0 = vector.load %arg1[%c0, %c0_0] : memref<8x256xf32, #tpu.memory_space<vmem>>, vector<8x256xf32>
    %cst = arith.constant dense<0xFF800000> : vector<8xf32>
    %1 = vector.multi_reduction <maximumf>, %0, %cst [1] : vector<8x256xf32> to vector<8xf32>
    %2 = vector.shape_cast %1 : vector<8xf32> to vector<8x1xf32>
    %3 = vector.broadcast %2 : vector<8x1xf32> to vector<8x256xf32>
    %4 = arith.subf %0, %3 : vector<8x256xf32>
    %5 = math.exp %4 : vector<8x256xf32>
    %c0_1 = arith.constant 0 : index
    %c0_2 = arith.constant 0 : index
    %6 = vector.load %arg2[%c0_1, %c0_2] : memref<256x128xf32, #tpu.memory_space<vmem>>, vector<256x128xf32>
    %cst_3 = arith.constant dense<0.000000e+00> : vector<8x128xf32>
    %7 = tpu.matmul %5, %6, %cst_3 {dimension_numbers = #tpu.dot_dimension_numbers<[1], [0], [0], [1], [0, 0, 1, 1], [], []>, precision = #tpu.contract_precision<fp32>} : vector<8x256xf32>, vector<256x128xf32>, vector<8x128xf32> -> vector<8x128xf32>
    %8 = vector.extract_strided_slice %7 {offsets = [0, 2], sizes = [8, 1], strides = [1, 1]} : vector<8x128xf32> to vector<8x1xf32>
    %9 = tpu.reciprocal %8 : vector<8x1xf32> -> vector<8x1xf32>
    %10 = vector.extract_strided_slice %7 {offsets = [0, 0], sizes = [8, 2], strides = [1, 1]} : vector<8x128xf32> to vector<8x2xf32>
    %11 = vector.broadcast %9 : vector<8x1xf32> to vector<8x2xf32>
    %12 = arith.mulf %10, %11 : vector<8x2xf32>
    %c0_4 = arith.constant 0 : index
    %c0_5 = arith.constant 0 : index
    %13 = vector.load %arg3[%c0_4, %c0_5] : memref<8x2xf32, #tpu.memory_space<vmem>>, vector<8x2xf32>
    tpu.vector_store %arg3[%c0_4, %c0_5], %12 {strides = array<i32>} : memref<8x2xf32, #tpu.memory_space<vmem>>, vector<8x2xf32>,
    return
  }
  func.func @transform_0(%arg0: i32) -> (i32, i32) {
    %c0_i32 = arith.constant 0 : i32
    %c0_i32_0 = arith.constant 0 : i32
    return %arg0, %c0_i32 : i32, i32
  }
  func.func @transform_1(%arg0: i32) -> (i32, i32) {
    %c0_i32 = arith.constant 0 : i32
    %c0_i32_0 = arith.constant 0 : i32
    %c0_i32_1 = arith.constant 0 : i32
    return %c0_i32, %c0_i32_0 : i32, i32
  }
  func.func @transform_2(%arg0: i32) -> (i32, i32) {
    %c0_i32 = arith.constant 0 : i32
    %c0_i32_0 = arith.constant 0 : i32
    return %arg0, %c0_i32 : i32, i32
  }
}

</mosaic_0001>

<bundles_post_ra>
// kernel: tpu_custom_call.1
= control target key start
LH: loop header
LB: loop body
LE: loop exit
PB: predicated region body
PF: predicated region fallthrough
CT: control target
= control target key end

     0   :  { %7 = vsyncpa [#allocation3], 0  ;;  %s1992_s0 = inlined_call_operand.hbm [shape: f32[8,256], index: 0, kind: input, shape index: {}]   ;;  %s1993_s1 = inlined_call_operand.hbm [shape: f32[256,128], index: 1, kind: input, shape index: {}]   ;;  %s1994_s2 = inlined_call_operand.vmem [shape: f32[8,2], index: 2, kind: output, shape index: {}]  }
   0x1   :  { %8 = vsyncpa [#allocation5], 0  ;;  %s1419_s9 = smov [#allocation2]   ;;  %s1420_s11 = smov [#allocation4]  }
   0x2   :  { %s15_s10 = sshll.u32 %s1419_s9, 4  ;;  %s24_s12 = sshll.u32 %s1420_s11, 4  ;;  %s16_s10 = int_to_ptr.vmem [resolvable:$true] %s15_s10  ;;  %s1439_s12 = int_to_ptr.vmem [resolvable:$true] %s24_s12 }
   0x3   :  { %s1371_s15 = scalar_lea.hbm %s1992_s0, 256 }
   0x4   :  { %p1372_p0 = scmp.ne.s32.totalorder %s1992_s0, %s1371_s15  ;;  %p1375_p1 = scmp.lt.u32.totalorder %s1371_s15, %s1992_s0 }
   0x6   :  { %p1377_p2 = pnand %p1375_p1, %p1372_p0 }
   0x8   :  { %1380 = shalt.err (!%p1377_p2)
}
   0x9   :  { %s1381_s20 = scalar_lea.vmem %s16_s10, 256  ;;  %p1386_p4 = scmp.lt.s32.totalorder %s16_s10, %s16_s10 }
   0xa   :  { %p1382_p3 = scmp.ne.s32.totalorder %s16_s10, %s1381_s20  ;;  %p1387_p5 = scmp.lt.s32.totalorder %s1381_s20, %s1381_s20 }
   0xc   :  { %p1388_p6 = por %p1387_p5, %p1386_p4 }
   0xe   :  { %p1389_p7 = pnand %p1388_p6, %p1382_p3 }
  0x10   :  { %1392 = shalt.err (!%p1389_p7)
}
  0x11   :  { %18 = dma.hbm_to_vmem [thread:$0]  %s1992_s0, 256, %s16_s10, [#allocation3]  }
  0x12   :  { %s1393_s25 = scalar_lea.hbm %s1993_s1, 4096 }
  0x13   :  { %p1394_p8 = scmp.ne.s32.totalorder %s1993_s1, %s1393_s25  ;;  %p1397_p9 = scmp.lt.u32.totalorder %s1393_s25, %s1993_s1 }
  0x15   :  { %p1399_p10 = pnand %p1397_p9, %p1394_p8 }
  0x17   :  { %1402 = shalt.err (!%p1399_p10)
}
  0x18   :  { %s1403_s30 = scalar_lea.vmem %s1439_s12, 4096  ;;  %p1408_p12 = scmp.lt.s32.totalorder %s1439_s12, %s1439_s12 }
  0x19   :  { %p1404_p11 = scmp.ne.s32.totalorder %s1439_s12, %s1403_s30  ;;  %p1409_p13 = scmp.lt.s32.totalorder %s1403_s30, %s1403_s30 }
  0x1b   :  { %p1410_p0 = por %p1409_p13, %p1408_p12 }
  0x1d   :  { %p1411_p1 = pnand %p1410_p0, %p1404_p11 }
  0x1f   :  { %1414 = shalt.err (!%p1411_p1)
}
  0x20   :  { %s1421_s0 = smov 128   ;;  %s1422_s3 = smov 8  }
  0x21   :  { %30 = dma.hbm_to_vmem [thread:$0]  %s1993_s1, 4096, %s1439_s12, [#allocation5], %s1421_s0, %s1421_s0, %s1422_s3  }
  0x22   :  { %1415 = dma.done.wait [#allocation3], 256  }
  0x23   :  { %1416 = vsyncadd [#allocation3], 4294967040 }
  0x24   :  { %1417 = dma.done.wait [#allocation5], 4096  }
  0x25   :  { %1418 = vsyncadd [#allocation5], 4294963200  ;;  %v1470_v0 = vld [vmem:[#allocation2] sm:$0xff]  ;;  %v1472_v1 = vld [vmem:[#allocation2 + $0x8] sm:$0xff]  ;;  %vm949_vm0 = vcmask 15360  }
  0x26   :  { %v64_v2 = vld [vmem:[#allocation4 + $0x80] sm:$0xff]  ;;  %v39_v3 = vmax.f32 %v1470_v0, %v1472_v1  ;;  %v65_v4 = vld [vmem:[#allocation4 + $0x88] sm:$0xff]  ;;  %v66_v11 = vld [vmem:[#allocation4 + $0x90] sm:$0xff] }
  0x27   :  { %v129_v5 = vand.u32 4294901760, %v64_v2  ;;  %v48_v6 = vld [vmem:[#allocation4] sm:$0xff]  ;;  %v49_v7 = vld [vmem:[#allocation4 + $0x8] sm:$0xff]  ;;  %v132_v8 = vand.u32 4294901760, %v65_v4  ;;  %v67_v12 = vld [vmem:[#allocation4 + $0x98] sm:$0xff]  ;;  %v135_v15 = vand.u32 4294901760, %v66_v11 }
  0x28   :  { %v81_v9 = vand.u32 4294901760, %v48_v6  ;;  %v84_v10 = vand.u32 4294901760, %v49_v7  ;;  %v1476_v13 = vld [vmem:[#allocation4 + $0x10] sm:$0xff]  ;;  %40 = vmax.xlane.f32.xlu0 %v39_v3  ;;  %v138_v16 = vand.u32 4294901760, %v67_v12  ;;  %v1480_v17 = vld [vmem:[#allocation4 + $0x18] sm:$0xff]  ;;  %v1531_v43 = vld [vmem:[#allocation4 + $0xa0] sm:$0xff] }
  0x29   :  { %v1478_v14 = vsub.f32 %v64_v2, %v129_v5  ;;  %v87_v18 = vand.u32 4294901760, %v1476_v13  ;;  %v1483_v19 = vsub.f32 %v65_v4, %v132_v8  ;;  %v90_v22 = vand.u32 4294901760, %v1480_v17  ;;  %v1536_v48 = vld [vmem:[#allocation4 + $0xa8] sm:$0xff]  ;;  %v1538_v49 = vld [vmem:[#allocation4 + $0x20] sm:$0xff]  ;;  %v1545_v59 = vld [vmem:[#allocation4 + $0xb0] sm:$0xff] }
  0x2a   :  { %v1485_v20 = vsub.f32 %v48_v6, %v81_v9  ;;  %v1487_v21 = vsub.f32 %v49_v7, %v84_v10  ;;  %v1491_v24 = vsub.f32 %v66_v11, %v135_v15  ;;  %v1493_v25 = vsub.f32 %v67_v12, %v138_v16  ;;  %v1542_v54 = vld [vmem:[#allocation4 + $0x28] sm:$0xff]  ;;  %v1547_v60 = vld [vmem:[#allocation4 + $0xb8] sm:$0xff]  ;;  %v1554_v3 = vld [vmem:[#allocation4 + $0x30] sm:$0xff] }
  0x2b   :  { %v2006_v23 = vand.u32 4294901760, %v1478_v14  ;;  %v1498_v26 = vsub.f32 %v1476_v13, %v87_v18  ;;  %v2005_v27 = vand.u32 4294901760, %v1483_v19  ;;  %v1504_v30 = vsub.f32 %v1480_v17, %v90_v22  ;;  %v1573_v12 = vld [vmem:[#allocation4 + $0x38] sm:$0xff] }
  0x2c   :  { %v2004_v28 = vand.u32 4294901760, %v1485_v20  ;;  %v2003_v29 = vand.u32 4294901760, %v1487_v21  ;;  %v2002_v32 = vand.u32 4294901760, %v1491_v24  ;;  %v2001_v33 = vand.u32 4294901760, %v1493_v25 }
  0x2d   :  { %v308_v31 = vsub.f32 %v1478_v14, %v2006_v23  ;;  %v2000_v34 = vand.u32 4294901760, %v1498_v26  ;;  %v315_v35 = vsub.f32 %v1483_v19, %v2005_v27  ;;  %v1997_v38 = vand.u32 4294901760, %v1504_v30 }
  0x2e   :  { %v196_v36 = vsub.f32 %v1485_v20, %v2004_v28  ;;  %v203_v37 = vsub.f32 %v1487_v21, %v2003_v29  ;;  %v322_v40 = vsub.f32 %v1491_v24, %v2002_v32  ;;  %v329_v41 = vsub.f32 %v1493_v25, %v2001_v33  ;;  %v1714_v32 = vld [vmem:[#allocation4 + $0xe0] sm:$0xff]  ;;  %v1716_v29 = vld [vmem:[#allocation4 + $0xe8] sm:$0xff] }
  0x2f   :  { %v309_v39 = vand.u32 4294901760, %v308_v31  ;;  %v210_v42 = vsub.f32 %v1498_v26, %v2000_v34  ;;  %v316_v44 = vand.u32 4294901760, %v315_v35  ;;  %v217_v47 = vsub.f32 %v1504_v30, %v1997_v38 }
  0x30   :  { %v197_v45 = vand.u32 4294901760, %v196_v36  ;;  %v204_v46 = vand.u32 4294901760, %v203_v37  ;;  %v323_v50 = vand.u32 4294901760, %v322_v40  ;;  %v330_v51 = vand.u32 4294901760, %v329_v41 }
  0x31   :  { %v211_v52 = vand.u32 4294901760, %v210_v42  ;;  %v1540_v53 = vpack.c.bf16 %v132_v8, %v129_v5  ;;  %v1199_v55 = vpack.c.bf16 %v316_v44, %v309_v39  ;;  %v218_v57 = vand.u32 4294901760, %v217_v47 }
  0x32   :  { %v1201_v56 = vpack.c.bf16 %v204_v46, %v197_v45  ;;  %v141_v58 = vand.u32 4294901760, %v1531_v43  ;;  %v1203_v61 = vpack.c.bf16 %v330_v51, %v323_v50  ;;  %v144_v62 = vand.u32 4294901760, %v1536_v48  ;;  %v1619_v50 = vld [vmem:[#allocation4 + $0xc0] sm:$0xff] }
  0x33   :  { %1168 = vmatprep.subr.bf16.mxu0 %v1540_v53  ;;  %v1551_v63 = vpack.c.bf16 %v84_v10, %v81_v9  ;;  %v93_v2 = vand.u32 4294901760, %v1538_v49  ;;  %1200 = vmatprep.subr.bf16.mxu1 %v1199_v55  ;;  %v1205_v4 = vpack.c.bf16 %v218_v57, %v211_v52  ;;  %v96_v6 = vand.u32 4294901760, %v1542_v54 }
  0x34   :  { %v1557_v5 = vsub.f32 %v1531_v43, %v141_v58  ;;  %v1560_v7 = vpack.c.bf16 %v138_v16, %v135_v15  ;;  %1202 = vmatpush3.bf16.msra.mxu1 %v1201_v56  ;;  %v1563_v8 = vsub.f32 %v1536_v48, %v144_v62  ;;  %v147_v10 = vand.u32 4294901760, %v1545_v59  ;;  %v1627_v56 = vld [vmem:[#allocation4 + $0xc8] sm:$0xff] }
  0x35   :  { %1170 = vmatpush3.bf16.msra.mxu0 %v1551_v63  ;;  %v1569_v9 = vsub.f32 %v1538_v49, %v93_v2  ;;  %v150_v11 = vand.u32 4294901760, %v1547_v60  ;;  %1204 = vmatprep.subr.bf16.mxu1 %v1203_v61  ;;  %v1577_v16 = vsub.f32 %v1542_v54, %v96_v6  ;;  %v1582_v17 = vpack.c.bf16 %v90_v22, %v87_v18 }
  0x36   :  { %v2018_v15 = vand.u32 4294901760, %v1557_v5  ;;  %1172 = vmatprep.subr.bf16.mxu0 %v1560_v7  ;;  %v99_v31 = vand.u32 4294901760, %v1554_v3  ;;  %v2016_v35 = vand.u32 4294901760, %v1563_v8  ;;  %v1588_v37 = vsub.f32 %v1545_v59, %v147_v10 }
  0x37   :  { %v2013_v36 = vand.u32 4294901760, %v1569_v9  ;;  %v1591_v39 = vsub.f32 %v1547_v60, %v150_v11  ;;  %v2012_v13 = vand.u32 4294901760, %v1577_v16  ;;  %v102_v18 = vand.u32 4294901760, %v1573_v12 }
  0x38   :  { %v336_v40 = vsub.f32 %v1557_v5, %v2018_v15  ;;  %v1601_v22 = vsub.f32 %v1554_v3, %v99_v31  ;;  %1206 = vmatpush3.bf16.msra.mxu1 %v1205_v4  ;;  %v343_v41 = vsub.f32 %v1563_v8, %v2016_v35  ;;  %v1995_v43 = vand.u32 4294901760, %v1588_v37  ;;  %v1635_v4 = vld [vmem:[#allocation4 + $0x40] sm:$0xff] }
  0x39   :  { %v224_v42 = vsub.f32 %v1569_v9, %v2013_v36  ;;  %v1996_v44 = vand.u32 4294901760, %v1591_v39  ;;  %1174 = vmatpush3.bf16.msra.mxu0 %v1582_v17  ;;  %v231_v46 = vsub.f32 %v1577_v16, %v2012_v13  ;;  %v1617_v48 = vsub.f32 %v1573_v12, %v102_v18  ;;  %v61_v36 = vld [vmem:[#allocation4 + $0x68] sm:$0xff] }
  0x3a   :  { %v337_v45 = vand.u32 4294901760, %v336_v40  ;;  %v1998_v47 = vand.u32 4294901760, %v1601_v22  ;;  %v344_v51 = vand.u32 4294901760, %v343_v41  ;;  %v350_v54 = vsub.f32 %v1588_v37, %v1995_v43  ;;  %v1638_v43 = vld [vmem:[#allocation4 + $0x48] sm:$0xff] }
  0x3b   :  { %v225_v52 = vand.u32 4294901760, %v224_v42  ;;  %v357_v55 = vsub.f32 %v1591_v39, %v1996_v44  ;;  %v232_v57 = vand.u32 4294901760, %v231_v46  ;;  %v1999_v60 = vand.u32 4294901760, %v1617_v48 }
  0x3c   :  { %v238_v59 = vsub.f32 %v1601_v22, %v1998_v47  ;;  %v1633_v61 = vpack.c.bf16 %v144_v62, %v141_v58  ;;  %v1207_v12 = vpack.c.bf16 %v344_v51, %v337_v45  ;;  %v351_v40 = vand.u32 4294901760, %v350_v54  ;;  %v1645_v62 = vld [vmem:[#allocation4 + $0xd0] sm:$0xff]  ;;  %v1647_v47 = vld [vmem:[#allocation4 + $0xd8] sm:$0xff] }
  0x3d   :  { %v358_v41 = vand.u32 4294901760, %v357_v55  ;;  %v153_v42 = vand.u32 4294901760, %v1619_v50  ;;  %v1209_v44 = vpack.c.bf16 %v232_v57, %v225_v52  ;;  %v245_v46 = vsub.f32 %v1617_v48, %v1999_v60 }
  0x3e   :  { %v239_v38 = vand.u32 4294901760, %v238_v59  ;;  %1176 = vmatprep.subr.bf16.mxu0 %v1633_v61  ;;  %v156_v58 = vand.u32 4294901760, %v1627_v56  ;;  %1208 = vmatprep.subr.bf16.mxu1 %v1207_v12  ;;  %v1654_v52 = vpack.c.bf16 %v96_v6, %v93_v2  ;;  %v105_v54 = vand.u32 4294901760, %v1635_v4 }
  0x3f   :  { %v1211_v45 = vpack.c.bf16 %v358_v41, %v351_v40  ;;  %v1650_v51 = vsub.f32 %v1619_v50, %v153_v42  ;;  %1210 = vmatpush3.bf16.msra.mxu1 %v1209_v44  ;;  %v246_v55 = vand.u32 4294901760, %v245_v46  ;;  %v108_v59 = vand.u32 4294901760, %v1638_v43  ;;  %v1670_v44 = vld [vmem:[#allocation4 + $0x50] sm:$0xff]  ;;  %v1672_v50 = vld [vmem:[#allocation4 + $0x58] sm:$0xff] }
  0x40   :  { %2037 = vst [vmem:[#allocation8_spill] sm:$0xff] %v1654_v52  ;;  %v1658_v57 = vsub.f32 %v1627_v56, %v156_v58  ;;  %v1661_v60 = vpack.c.bf16 %v150_v11, %v147_v10  ;;  %1178 = vmatpush3.bf16.msra.mxu0 %v1654_v52  ;;  %v1666_v49 = vsub.f32 %v1635_v4, %v105_v54  ;;  %v159_v2 = vand.u32 4294901760, %v1645_v62 }
  0x41   :  { %1212 = vmatprep.subr.bf16.mxu1 %v1211_v45  ;;  %v2010_v12 = vand.u32 4294901760, %v1650_v51  ;;  %v162_v6 = vand.u32 4294901760, %v1647_v47  ;;  %v1213_v56 = vpack.c.bf16 %v246_v55, %v239_v38  ;;  %v1676_v11 = vsub.f32 %v1638_v43, %v108_v59 }
  0x42   :  { %2038 = vst [vmem:[#allocation9_spill] sm:$0xff] %v1661_v60  ;;  %v2009_v10 = vand.u32 4294901760, %v1658_v57  ;;  %1180 = vmatprep.subr.bf16.mxu0 %v1661_v60  ;;  %v1681_v4 = vpack.c.bf16 %v102_v18, %v99_v31  ;;  %v2008_v41 = vand.u32 4294901760, %v1666_v49  ;;  %v1688_v46 = vsub.f32 %v1645_v62, %v159_v2 }
  0x43   :  { %v364_v40 = vsub.f32 %v1650_v51, %v2010_v12  ;;  %v1691_v38 = vsub.f32 %v1647_v47, %v162_v6  ;;  %1214 = vmatpush3.bf16.msra.mxu1 %v1213_v56  ;;  %v2007_v3 = vand.u32 4294901760, %v1676_v11  ;;  %v111_v31 = vand.u32 4294901760, %v1670_v44 }
  0x44   :  { %2039 = vst [vmem:[#allocation10_spill] sm:$0xff] %v1681_v4  ;;  %v371_v43 = vsub.f32 %v1658_v57, %v2009_v10  ;;  %v114_v18 = vand.u32 4294901760, %v1672_v50  ;;  %v252_v62 = vsub.f32 %v1666_v49, %v2008_v41  ;;  %v2011_v55 = vand.u32 4294901760, %v1688_v46  ;;  %1182 = vmatpush3.bf16.msra.mxu0 %v1681_v4  ;;  %v1728_v10 = vld [vmem:[#allocation4 + $0x60] sm:$0xff] }
  0x45   :  { %v365_v45 = vand.u32 4294901760, %v364_v40  ;;  %v2014_v47 = vand.u32 4294901760, %v1691_v38  ;;  %v259_v34 = vsub.f32 %v1676_v11, %v2007_v3  ;;  %v1709_v33 = vsub.f32 %v1670_v44, %v111_v31 }
  0x46   :  { %v372_v56 = vand.u32 4294901760, %v371_v43  ;;  %v1712_v40 = vsub.f32 %v1672_v50, %v114_v18  ;;  %v253_v28 = vand.u32 4294901760, %v252_v62  ;;  %v378_v27 = vsub.f32 %v1688_v46, %v2011_v55 }
  0x47   :  { %v385_v43 = vsub.f32 %v1691_v38, %v2014_v47  ;;  %v1724_v23 = vpack.c.bf16 %v156_v58, %v153_v42  ;;  %v260_v3 = vand.u32 4294901760, %v259_v34  ;;  %v2015_v50 = vand.u32 4294901760, %v1709_v33 }
  0x48   :  { %v1215_v44 = vpack.c.bf16 %v372_v56, %v365_v45  ;;  %v2017_v41 = vand.u32 4294901760, %v1712_v40  ;;  %v379_v12 = vand.u32 4294901760, %v378_v27  ;;  %v165_v55 = vand.u32 4294901760, %v1714_v32  ;;  %v78_v27 = vld [vmem:[#allocation4 + $0xf0] sm:$0xff] }
  0x49   :  { %2040 = vst [vmem:[#allocation11_spill] sm:$0xff] %v1724_v23  ;;  %v386_v62 = vand.u32 4294901760, %v385_v43  ;;  %1184 = vmatprep.subr.bf16.mxu0 %v1724_v23  ;;  %v168_v13 = vand.u32 4294901760, %v1716_v29  ;;  %v1217_v42 = vpack.c.bf16 %v260_v3, %v253_v28  ;;  %v266_v34 = vsub.f32 %v1709_v33, %v2015_v50  ;;  %v79_v3 = vld [vmem:[#allocation4 + $0xf8] sm:$0xff] }
  0x4a   :  { %1216 = vmatprep.subr.bf16.mxu1 %v1215_v44  ;;  %v273_v58 = vsub.f32 %v1712_v40, %v2017_v41  ;;  %v1739_v45 = vpack.c.bf16 %v108_v59, %v105_v54  ;;  %v1742_v43 = vsub.f32 %v1714_v32, %v165_v55  ;;  %v117_v28 = vand.u32 4294901760, %v1728_v10 }
  0x4b   :  { %v1219_v56 = vpack.c.bf16 %v386_v62, %v379_v12  ;;  %v1745_v47 = vsub.f32 %v1716_v29, %v168_v13  ;;  %1218 = vmatpush3.bf16.msra.mxu1 %v1217_v42  ;;  %v267_v44 = vand.u32 4294901760, %v266_v34  ;;  %v120_v35 = vand.u32 4294901760, %v61_v36  ;;  %v62_v12 = vld [vmem:[#allocation4 + $0x70] sm:$0xff]  ;;  %v63_v62 = vld [vmem:[#allocation4 + $0x78] sm:$0xff] }
  0x4c   :  { %2041 = vst [vmem:[#allocation12_spill] sm:$0xff] %v1739_v45  ;;  %v274_v50 = vand.u32 4294901760, %v273_v58  ;;  %1186 = vmatpush3.bf16.msra.mxu0 %v1739_v45  ;;  %v1749_v41 = vpack.c.bf16 %v162_v6, %v159_v2  ;;  %v2021_v54 = vand.u32 4294901760, %v1742_v43  ;;  %v1754_v59 = vsub.f32 %v1728_v10, %v117_v28 }
  0x4d   :  { %1220 = vmatprep.subr.bf16.mxu1 %v1219_v56  ;;  %v2022_v32 = vand.u32 4294901760, %v1745_v47  ;;  %v171_v29 = vand.u32 4294901760, %v78_v27  ;;  %v1756_v42 = vsub.f32 %v61_v36, %v120_v35  ;;  %v174_v34 = vand.u32 4294901760, %v79_v3 }
  0x4e   :  { %2042 = vst [vmem:[#allocation13_spill] sm:$0xff] %v1749_v41  ;;  %v1221_v15 = vpack.c.bf16 %v274_v50, %v267_v44  ;;  %1188 = vmatprep.subr.bf16.mxu0 %v1749_v41  ;;  %v1759_v58 = vpack.c.bf16 %v114_v18, %v111_v31  ;;  %v392_v2 = vsub.f32 %v1742_v43, %v2021_v54  ;;  %v2031_v10 = vand.u32 4294901760, %v1754_v59 }
  0x4f   :  { %v399_v6 = vsub.f32 %v1745_v47, %v2022_v32  ;;  %v1768_v56 = vsub.f32 %v78_v27, %v171_v29  ;;  %v2036_v36 = vand.u32 4294901760, %v1756_v42  ;;  %v1771_v50 = vsub.f32 %v79_v3, %v174_v34 }
  0x50   :  { %2043 = vst [vmem:[#allocation14_spill] sm:$0xff] %v1759_v58  ;;  %1222 = vmatpush3.bf16.msra.mxu1 %v1221_v15  ;;  %1190 = vmatpush3.bf16.msra.mxu0 %v1759_v58  ;;  %v123_v31 = vand.u32 4294901760, %v62_v12  ;;  %v126_v18 = vand.u32 4294901760, %v63_v62  ;;  %v393_v44 = vand.u32 4294901760, %v392_v2  ;;  %v280_v54 = vsub.f32 %v1754_v59, %v2031_v10 }
  0x51   :  { %v400_v41 = vand.u32 4294901760, %v399_v6  ;;  %v405_v32 = vand.u32 4294901760, %v1768_v56  ;;  %v287_v15 = vsub.f32 %v1756_v42, %v2036_v36  ;;  %v412_v27 = vand.u32 4294901760, %v1771_v50 }
  0x52   :  { %v1782_v3 = vsub.f32 %v62_v12, %v123_v31  ;;  %v1784_v45 = vsub.f32 %v63_v62, %v126_v18  ;;  %v281_v23 = vand.u32 4294901760, %v280_v54  ;;  %v1787_v6 = vpack.c.bf16 %v168_v13, %v165_v55 }
  0x53   :  { %v1223_v58 = vpack.c.bf16 %v400_v41, %v393_v44  ;;  %v406_v2 = vsub.f32 %v1768_v56, %v405_v32  ;;  %v288_v4 = vand.u32 4294901760, %v287_v15  ;;  %v413_v10 = vsub.f32 %v1771_v50, %v412_v27 }
  0x54   :  { %v293_v60 = vand.u32 4294901760, %v1782_v3  ;;  %v300_v52 = vand.u32 4294901760, %v1784_v45  ;;  %1192 = vmatprep.subr.bf16.mxu0 %v1787_v6  ;;  %v1793_v12 = vpack.c.bf16 %v120_v35, %v117_v28  ;;  %v1795_v62 = vpack.c.bf16 %v174_v34, %v171_v29 }
  0x55   :  { %1224 = vmatprep.subr.bf16.mxu1 %v1223_v58  ;;  %v407_v36 = vand.u32 4294901760, %v406_v2  ;;  %v1797_v41 = vpack.c.bf16 %v126_v18, %v123_v31  ;;  %v1225_v54 = vpack.c.bf16 %v288_v4, %v281_v23  ;;  %v414_v13 = vand.u32 4294901760, %v413_v10 }
  0x56   :  { %v294_v55 = vsub.f32 %v1782_v3, %v293_v60  ;;  %v301_v44 = vsub.f32 %v1784_v45, %v300_v52  ;;  %1194 = vmatpush3.bf16.msra.mxu0 %v1793_v12  ;;  %v1231_v58 = vpack.c.bf16 %v1483_v19, %v1478_v14  ;;  %v1239_v34 = vpack.c.bf16 %v1563_v8, %v1557_v5 }
  0x57   :  { %1226 = vmatpush3.bf16.msra.mxu1 %v1225_v54  ;;  %v1227_v23 = vpack.c.bf16 %v414_v13, %v407_v36  ;;  %1196 = vmatprep.subr.bf16.mxu0 %v1795_v62  ;;  %v1243_v18 = vpack.c.bf16 %v1591_v39, %v1588_v37  ;;  %v1245_v36 = vpack.c.bf16 %v1617_v48, %v1601_v22  ;;  %v2047_v28 = vand.u32 4294901760, %v1577_v16 }
  0x58   :  { %v295_v4 = vand.u32 4294901760, %v294_v55  ;;  %v302_v29 = vand.u32 4294901760, %v301_v44  ;;  %v1247_v2 = vpack.c.bf16 %v1658_v57, %v1650_v51  ;;  %v1249_v54 = vpack.c.bf16 %v1676_v11, %v1666_v49 }
  0x59   :  { %1228 = vmatprep.subr.bf16.mxu1 %v1227_v23  ;;  %v1251_v13 = vpack.c.bf16 %v1691_v38, %v1688_v46  ;;  %v2046_v55 = vand.u32 4294901760, %v1569_v9  ;;  %v2049_v35 = vand.u32 4294901760, %v1658_v57  ;;  %v2057_v57 = vand.u32 4294901760, %v1742_v43 }
  0x5a   :  { %v1229_v31 = vpack.c.bf16 %v302_v29, %v295_v4  ;;  %1198 = vmatpush3.bf16.msra.mxu0 %v1797_v41  ;;  %v2044_v29 = vand.u32 4294901760, %v1557_v5  ;;  %v2050_v4 = vand.u32 4294901760, %v1666_v49  ;;  %v2051_v5 = vand.u32 4294901760, %v1676_v11 }
  0x5b   :  { %1232 = vmatprep.subr.bf16.mxu0 %v1231_v58  ;;  %v1847_v44 = vpack.c.bf16 %v2047_v28, %v2046_v55  ;;  %v2048_v58 = vand.u32 4294901760, %v1650_v51  ;;  %v2054_v28 = vand.u32 4294901760, %v1709_v33  ;;  %v2055_v51 = vand.u32 4294901760, %v1712_v40 }
  0x5c   :  { %1230 = vmatpush3.bf16.msra.mxu1 %v1229_v31  ;;  %v2045_v31 = vand.u32 4294901760, %v1563_v8  ;;  %v1859_v15 = vpack.c.bf16 %v2051_v5, %v2050_v4  ;;  %v2052_v8 = vand.u32 4294901760, %v1688_v46  ;;  %v2058_v49 = vand.u32 4294901760, %v1745_v47 }
  0x5d   :  { %1264 = vmatprep.subr.bf16.mxu1 %v1540_v53  ;;  %v1853_v23 = vpack.c.bf16 %v2049_v35, %v2048_v58  ;;  %v1871_v55 = vpack.c.bf16 %v2055_v51, %v2054_v28  ;;  %v2060_v11 = vand.u32 4294901760, %v1754_v59  ;;  %v2061_v46 = vand.u32 4294901760, %v1756_v42 }
  0x5e   :  { %v1841_v10 = vpack.c.bf16 %v2045_v31, %v2044_v29  ;;  %v2053_v29 = vand.u32 4294901760, %v1691_v38  ;;  %v1877_v35 = vpack.c.bf16 %v2058_v49, %v2057_v57  ;;  %v1885_v38 = vpack.c.bf16 %v412_v27, %v405_v32 }
  0x5f   :  { %2056 = vst [vmem:[#allocation15_spill] sm:$0xff] %v1871_v55  ;;  %v1883_v58 = vpack.c.bf16 %v2061_v46, %v2060_v11  ;;  %v1887_v4 = vpack.c.bf16 %v300_v52, %v293_v60 }
  0x60   :  { %v1865_v31 = vpack.c.bf16 %v2053_v29, %v2052_v8  ;;  %2059 = vst [vmem:[#allocation16_spill] sm:$0xff] %v1877_v35 }
  0xb5   :  { %v41_v5 = vpop.xlane.xlu0 %40 }
  0xb6   :  { %v42_v8 = vsub.f32 %v1470_v0, %v41_v5  ;;  %v43_v29 = vsub.f32 %v1472_v1, %v41_v5  ;;  %v2062_v5 = vpack.c.bf16 %v1487_v21, %v1485_v20 }
  0xb8   :  { %v44_v28 = vmul.f32 1.442695, %v42_v8  ;;  %v46_v51 = vmul.f32 1.442695, %v43_v29  ;;  %v2063_v8 = vld [vmem:[#allocation8_spill] sm:$0xff]  ;;  %v2064_v29 = vpack.c.bf16 %v1493_v25, %v1491_v24 }
  0xba   :  { %1365 = vpow2.f32 %v44_v28  ;;  %v2065_v28 = vld [vmem:[#allocation9_spill] sm:$0xff] }
  0xbb   :  { %1367 = vpow2.f32 %v46_v51  ;;  %v2066_v51 = vpack.c.bf16 %v1504_v30, %v1498_v26 }
  0xc4   :  { %v1366_v57 = vpop.eup %1365 }
  0xc5   :  { %v1368_v49 = vpop.eup %1367  ;;  %v1891_v35 = vand.u32 4294901760, %v1366_v57 }
  0xc6   :  { %v176_v55 = vand.u32 4294901760, %v1368_v49 }
  0xc7   :  { %v183_v11 = vsub.f32 %v1366_v57, %v1891_v35  ;;  %v2067_v57 = vld [vmem:[#allocation10_spill] sm:$0xff] }
  0xc8   :  { %417 = vmatprep.mubr.f32.mxu1 %v176_v55  ;;  %v177_v32 = vsub.f32 %v1368_v49, %v176_v55  ;;  %v2068_v49 = vld [vmem:[#allocation11_spill] sm:$0xff] }
  0xc9   :  { %419 = vmatmul.mubr.f32.vlgmr.msra.gmra.mrb[0].mxu1 %v1891_v35  ;;  %v184_v60 = vand.u32 4294901760, %v183_v11 }
  0xca   :  { %1266 = vmatpush3.bf16.msra.mxu1 %v1551_v63  ;;  %v178_v0 = vand.u32 4294901760, %v177_v32 }
  0xcb   :  { %1268 = vmatprep.subr.bf16.mxu1 %v1560_v7  ;;  %v185_v1 = vsub.f32 %v183_v11, %v184_v60 }
  0xcc   :  { %661 = vmatprep.mubr.f32.mxu1 %v178_v0  ;;  %v179_v52 = vsub.f32 %v177_v32, %v178_v0  ;;  %v2069_v0 = vpack.c.bf16 %v1577_v16, %v1569_v9  ;;  %v2073_v9 = vpack.c.bf16 %v1712_v40, %v1709_v33  ;;  %v2074_v16 = vpack.c.bf16 %v1745_v47, %v1742_v43 }
  0xcd   :  { %v186_v27 = vand.u32 4294901760, %v185_v1  ;;  %v2071_v1 = vld [vmem:[#allocation13_spill] sm:$0xff]  ;;  %v2076_v33 = vpack.c.bf16 %v1771_v50, %v1768_v56  ;;  %v2077_v40 = vand.u32 4294901760, %v1478_v14  ;;  %v2081_v43 = vand.u32 4294901760, %v1487_v21 }
  0xce   :  { %1270 = vmatpush3.bf16.msra.mxu1 %v1582_v17  ;;  %v180_v46 = vand.u32 4294901760, %v179_v52  ;;  %v2072_v52 = vld [vmem:[#allocation14_spill] sm:$0xff]  ;;  %v2082_v14 = vand.u32 4294901760, %v1491_v24  ;;  %v2087_v21 = vand.u32 4294901760, %v1591_v39  ;;  %v2091_v39 = vld [vmem:[#allocation16_spill] sm:$0xff] }
  0xcf   :  { %1272 = vmatprep.subr.bf16.mxu1 %v1633_v61 }
  0xd0   :  { %181 = vmatprep.mubr.f32.mxu0 %v180_v46 }
  0xd1   :  { %187 = vmatmul.mubr.f32.vlgmr.msra.gmra.mrb[0].mxu0 %v186_v27 }
  0xd2   :  { %1234 = vmatpush3.bf16.msra.mxu0 %v2062_v5  ;;  %1274 = vmatpush3.bf16.msra.mxu1 %v2063_v8 }
  0xd3   :  { %554 = vmatprep.mubr.f32.mxu0 %v177_v32  ;;  %1236 = vmatprep.subr.bf16.mxu0 %v2064_v29  ;;  %v2070_v32 = vld [vmem:[#allocation12_spill] sm:$0xff] }
  0xd4   :  { %1276 = vmatprep.subr.bf16.mxu1 %v2065_v28 }
  0xd6   :  { %1238 = vmatpush3.bf16.msra.mxu0 %v2066_v51  ;;  %1278 = vmatpush3.bf16.msra.mxu1 %v2067_v57 }
  0xd7   :  { %1240 = vmatprep.subr.bf16.mxu0 %v1239_v34  ;;  %1280 = vmatprep.subr.bf16.mxu1 %v2068_v49  ;;  %v2075_v34 = vpack.c.bf16 %v1756_v42, %v1754_v59 }
  0xda   :  { %1242 = vmatpush3.bf16.msra.mxu0 %v2069_v0  ;;  %1282 = vmatpush3.bf16.msra.mxu1 %v2070_v32 }
  0xdb   :  { %1244 = vmatprep.subr.bf16.mxu0 %v1243_v18  ;;  %1284 = vmatprep.subr.bf16.mxu1 %v2071_v1  ;;  %v2078_v18 = vand.u32 4294901760, %v1483_v19  ;;  %v2083_v19 = vand.u32 4294901760, %v1493_v25  ;;  %v2088_v25 = vand.u32 4294901760, %v1601_v22  ;;  %v1423_v22 = vmov 2  }
  0xdc   :  { %1364 = vset.pattern.permute.xlu0 %v1423_v22 }
  0xdd   :  { %v1295_v47 = vpack.c.bf16 %v2078_v18, %v2077_v40  ;;  %v1299_v42 = vpack.c.bf16 %v2083_v19, %v2082_v14 }
  0xde   :  { %1246 = vmatpush3.bf16.msra.mxu0 %v1245_v36  ;;  %1286 = vmatpush3.bf16.msra.mxu1 %v2072_v52 }
  0xdf   :  { %1248 = vmatprep.subr.bf16.mxu0 %v1247_v2  ;;  %1288 = vmatprep.subr.bf16.mxu1 %v1787_v6 }
  0xe2   :  { %1250 = vmatpush3.bf16.msra.mxu0 %v1249_v54  ;;  %1290 = vmatpush3.bf16.msra.mxu1 %v1793_v12 }
  0xe3   :  { %1252 = vmatprep.subr.bf16.mxu0 %v1251_v13  ;;  %1292 = vmatprep.subr.bf16.mxu1 %v1795_v62 }
  0xe6   :  { %1254 = vmatpush3.bf16.msra.mxu0 %v2073_v9  ;;  %1294 = vmatpush3.bf16.msra.mxu1 %v1797_v41 }
  0xe7   :  { %1256 = vmatprep.subr.bf16.mxu0 %v2074_v16  ;;  %1328 = vmatprep.subr.bf16.mxu1 %v1540_v53  ;;  %v2079_v53 = vpack.c.bf16 %v1784_v45, %v1782_v3 }
  0xe9   :  { %665 = vmatmul.mubr.f32.vlgmr.msra.gmra.mrb[2].mxu1 %v184_v60 }
  0xea   :  { %1258 = vmatpush3.bf16.msra.mxu0 %v2075_v34  ;;  %1330 = vmatpush3.bf16.msra.mxu1 %v1551_v63  ;;  %v2080_v63 = vand.u32 4294901760, %v1485_v20  ;;  %v2086_v20 = vand.u32 4294901760, %v1588_v37  ;;  %v2090_v37 = vld [vmem:[#allocation15_spill] sm:$0xff] }
  0xeb   :  { %935 = vmatprep.mubr.f32.mxu1 %v176_v55  ;;  %1260 = vmatprep.subr.bf16.mxu0 %v2076_v33 }
  0xec   :  { %1332 = vmatprep.subr.bf16.mxu1 %v1560_v7  ;;  %v1297_v59 = vpack.c.bf16 %v2081_v43, %v2080_v63  ;;  %v2084_v7 = vand.u32 4294901760, %v1498_v26  ;;  %v1307_v24 = vpack.c.bf16 %v2087_v21, %v2086_v20  ;;  %v2089_v26 = vand.u32 4294901760, %v1617_v48 }
  0xee   :  { %1262 = vmatpush3.bf16.msra.mxu0 %v2079_v53  ;;  %1334 = vmatpush3.bf16.msra.mxu1 %v1582_v17  ;;  %v2085_v17 = vand.u32 4294901760, %v1504_v30  ;;  %v1309_v30 = vpack.c.bf16 %v2089_v26, %v2088_v25 }
  0xef   :  { %1296 = vmatprep.subr.bf16.mxu0 %v1295_v47  ;;  %1336 = vmatprep.subr.bf16.mxu1 %v1633_v61 }
  0xf0   :  { %v1301_v45 = vpack.c.bf16 %v2085_v17, %v2084_v7 }
  0xf1   :  { %557 = vmatmul.mubr.f32.vlgmr.msra.gmra.mrb[2].mxu0 %v183_v11 }
  0xf2   :  { %1298 = vmatpush3.bf16.msra.mxu0 %v1297_v59  ;;  %831 = vmatprep.mubr.f32.mxu0 %v176_v55 }
  0xf3   :  { %1338 = vmatpush3.bf16.msra.mxu1 %v2063_v8  ;;  %1300 = vmatprep.subr.bf16.mxu0 %v1299_v42 }
  0xf4   :  { %1340 = vmatprep.subr.bf16.mxu1 %v2065_v28 }
  0xf6   :  { %1302 = vmatpush3.bf16.msra.mxu0 %v1301_v45 }
  0xf7   :  { %1342 = vmatpush3.bf16.msra.mxu1 %v2067_v57  ;;  %1304 = vmatprep.subr.bf16.mxu0 %v1841_v10 }
  0xf8   :  { %1344 = vmatprep.subr.bf16.mxu1 %v2068_v49 }
  0xfa   :  { %1306 = vmatpush3.bf16.msra.mxu0 %v1847_v44 }
  0xfb   :  { %1346 = vmatpush3.bf16.msra.mxu1 %v2070_v32  ;;  %1308 = vmatprep.subr.bf16.mxu0 %v1307_v24 }
  0xfc   :  { %1348 = vmatprep.subr.bf16.mxu1 %v2071_v1 }
  0xfe   :  { %1310 = vmatpush3.bf16.msra.mxu0 %v1309_v30 }
  0xff   :  { %1350 = vmatpush3.bf16.msra.mxu1 %v2072_v52  ;;  %1312 = vmatprep.subr.bf16.mxu0 %v1853_v23 }
 0x100   :  { %1352 = vmatprep.subr.bf16.mxu1 %v1787_v6 }
 0x102   :  { %1314 = vmatpush3.bf16.msra.mxu0 %v1859_v15 }
 0x103   :  { %1354 = vmatpush3.bf16.msra.mxu1 %v1793_v12  ;;  %1316 = vmatprep.subr.bf16.mxu0 %v1865_v31 }
 0x104   :  { %1356 = vmatprep.subr.bf16.mxu1 %v1795_v62 }
 0x106   :  { %1318 = vmatpush3.bf16.msra.mxu0 %v2090_v37 }
 0x107   :  { %1358 = vmatpush3.bf16.msra.mxu1 %v1797_v41  ;;  %1320 = vmatprep.subr.bf16.mxu0 %v2091_v39 }
 0x10a   :  { %937 = vmatmul.mubr.f32.vlgmr.msra.gmra.mrb[4].mxu1 %v1891_v35  ;;  %1322 = vmatpush3.bf16.msra.mxu0 %v1883_v58 }
 0x10b   :  { %1324 = vmatprep.subr.bf16.mxu0 %v1885_v38 }
 0x10e   :  { %1326 = vmatpush3.bf16.msra.mxu0 %v1887_v4 }
 0x111   :  { %833 = vmatmul.mubr.f32.vlgmr.msra.gmra.mrb[4].mxu0 %v1891_v35 }
 0x19c   :  { %v1024_v48 = vpop.f32.mrb[0].mxu1 }
 0x19d   :  { %v1025_v61 = vpop.f32.mrb[1].mxu1 }
 0x19e   :  { %v1026_v56 = vadd.f32 %v1025_v61, %v1024_v48 }
 0x1a4   :  { %v989_v50 = vpop.f32.mrb[0].mxu0 }
 0x1a5   :  { %v990_v3 = vpop.f32.mrb[1].mxu0 }
 0x1a6   :  { %v991_v6 = vadd.f32 %v990_v3, %v989_v50 }
 0x1a8   :  { %v421_v12 = vadd.f32 %v1026_v56, %v991_v6 }
 0x1bc   :  { %v1094_v62 = vpop.f32.mrb[2].mxu1 }
 0x1bd   :  { %v1095_v41 = vpop.f32.mrb[3].mxu1 }
 0x1be   :  { %v1096_v15 = vadd.f32 %v1095_v41, %v1094_v62 }
 0x1c4   :  { %v1059_v10 = vpop.f32.mrb[2].mxu0 }
 0x1c5   :  { %v1060_v36 = vpop.f32.mrb[3].mxu0 }
 0x1c6   :  { %v1061_v2 = vadd.f32 %v1060_v36, %v1059_v10 }
 0x1c8   :  { %v559_v54 = vadd.f32 %v1061_v2, %v421_v12 }
 0x1ca   :  { %v667_v13 = vadd.f32 %v1096_v15, %v559_v54 }
 0x1dd   :  { %v1164_v44 = vpop.f32.mrb[4].mxu1 }
 0x1de   :  { %v1165_v23 = vpop.f32.mrb[5].mxu1 }
 0x1df   :  { %v1166_v31 = vadd.f32 %v1165_v23, %v1164_v44 }
 0x1e4   :  { %v1129_v55 = vpop.f32.mrb[4].mxu0 }
 0x1e5   :  { %v1130_v35 = vpop.f32.mrb[5].mxu0 }
 0x1e6   :  { %v1131_v58 = vadd.f32 %v1130_v35, %v1129_v55 }
 0x1e8   :  { %v835_v38 = vadd.f32 %v1131_v58, %v667_v13 }
 0x1ea   :  { %v939_v4 = vadd.f32 %v1166_v31, %v835_v38 }
 0x1ec   :  { %1369 = vrcp.f32 %v939_v4 }
 0x1f6   :  { %v1370_v11 = vpop.eup %1369 }
 0x1f7   :  { %945 = vperm.xlu0 %1364, %v1370_v11  }
 0x276   :  { %v946_v60 = vpop.permute.xlu0 %945 }
 0x277   :  { %v948_v27 = vmul.f32 %v946_v60, %v939_v4 }
 0x279   :  { %950 = vst.msk [vmem:[%s1994_s2] sm:$0xff] %vm949_vm0, %v948_v27 }
 0x27a   :  { %955 = vsyncpa [#allocation3], 1 }
 0x27b   :  { %956 = vsyncpa [#allocation5], 1 }

</bundles_post_ra>
